<compile_context>
chip_gen: v7x
topology: tpu7x:2x2x1
jax: 0.10.0
libtpu: 0.0.40
codegen_flags: <defaults>
</compile_context>

<pallas_src>
import jax
import jax.numpy as jnp
from jax import lax
from jax.experimental import pallas as pl
from jax.experimental.pallas import tpu as pltpu

EPS = 1e-5

# Row offsets of each weight matrix inside the packed (120, 32) weight slab.
# All offsets / extents are multiples of 8 -> sublane-aligned static slices.
_W1_ROWS = (0, 24)     # fc1:   (24, 32)
_W2_ROWS = (24, 56)    # fc2:   (32, 32)
_W3_ROWS = (56, 88)    # fc3:   (32, 16) padded to (32, 32)
_WMU_ROWS = (88, 120)  # fc_mu: (16, 4)  padded to (32, 32)


def munet2_kernel(x_ref, w_ref, v_ref, out_ref):
    x = x_ref[...].astype(jnp.float32)
    inv_b = jnp.float32(1.0 / x_ref.shape[0])

    # Static, sublane-aligned views into the packed slabs (no runtime cost).
    w1 = w_ref[_W1_ROWS[0]:_W1_ROWS[1], :]
    w2 = w_ref[_W2_ROWS[0]:_W2_ROWS[1], :]
    w3 = w_ref[_W3_ROWS[0]:_W3_ROWS[1], :]
    wmu = w_ref[_WMU_ROWS[0]:_WMU_ROWS[1], :]

    g1, be1 = v_ref[0:1, :], v_ref[1:2, :]
    g2, be2 = v_ref[2:3, :], v_ref[3:4, :]
    g3, be3 = v_ref[4:5, :], v_ref[5:6, :]
    bmu = v_ref[6:7, :]

    def bn_relu(h, gamma, beta):
        # One-pass batch statistics: var = E[h^2] - mean^2 (biased, training
        # mode). Both reductions depend only on the matmul result.
        s = jnp.sum(h, axis=0, keepdims=True)
        sq = jnp.sum(h * h, axis=0, keepdims=True)
        mean = s * inv_b
        var = sq * inv_b - mean * mean
        scale = gamma * lax.rsqrt(var + EPS)     # EUP rsqrt
        shift = beta - mean * scale
        return jnp.maximum(h * scale + shift, 0.0)

    # fc biases for layers 1-3 are omitted: training-mode BN cancels them.
    h = bn_relu(jnp.dot(x, w1, preferred_element_type=jnp.float32), g1, be1)
    h = bn_relu(jnp.dot(h, w2, preferred_element_type=jnp.float32), g2, be2)
    h = bn_relu(jnp.dot(h, w3, preferred_element_type=jnp.float32), g3, be3)
    mu = jnp.tanh(jnp.dot(h, wmu, preferred_element_type=jnp.float32) + bmu)

    out_ref[...] = mu[:, 0:4].astype(out_ref.dtype)


def munet2_forward(x, w_slab, v_slab):
    """x: (B, 24) f32.  w_slab: (120, 32) f32.  v_slab: (8, 32) f32."""
    B = x.shape[0]
    vmem = pl.BlockSpec(memory_space=pltpu.MemorySpace.VMEM)
    return pl.pallas_call(
        munet2_kernel,
        out_shape=jax.ShapeDtypeStruct((B, 4), jnp.float32),
        in_specs=[vmem, vmem, vmem],
        out_specs=vmem,
    )(x, w_slab, v_slab)


def init_params(key):
    """PyTorch-style init: Linear weights/biases uniform +-1/sqrt(fan_in),
    BatchNorm gamma=1 / beta=0.  Weights stored (in_features, out_features)."""
    dims = [(24, 32), (32, 32), (32, 16), (16, 4)]
    lin = []
    keys = jax.random.split(key, len(dims) * 2)
    for i, (fan_in, fan_out) in enumerate(dims):
        bound = 1.0 / jnp.sqrt(jnp.float32(fan_in))
        w = jax.random.uniform(keys[2 * i], (fan_in, fan_out),
                               minval=-bound, maxval=bound, dtype=jnp.float32)
        b = jax.random.uniform(keys[2 * i + 1], (1, fan_out),
                               minval=-bound, maxval=bound, dtype=jnp.float32)
        lin.append((w, b))

    (w1, b1), (w2, b2), (w3, b3), (wmu, bmu) = lin
    g1, be1 = jnp.ones((1, 32), jnp.float32), jnp.zeros((1, 32), jnp.float32)
    g2, be2 = jnp.ones((1, 32), jnp.float32), jnp.zeros((1, 32), jnp.float32)
    g3, be3 = jnp.ones((1, 16), jnp.float32), jnp.zeros((1, 16), jnp.float32)

    return (w1, b1, g1, be1,
            w2, b2, g2, be2,
            w3, b3, g3, be3,
            wmu, bmu)


def pack_params(params):
    """Pack the 14 module parameters into two lane-aligned VMEM slabs.

    Weight slab (120, 32): [w1 | w2 | w3 (cols padded) | wmu (rows+cols padded)]
    Vector slab (8, 32):   rows = g1, be1, g2, be2, g3, be3, bmu, 0
    Pre-BN biases b1/b2/b3 are intentionally dropped (BN cancels them).
    """
    (w1, _b1, g1, be1,
     w2, _b2, g2, be2,
     w3, _b3, g3, be3,
     wmu, bmu) = params

    def pad_cols(a, n=32):
        return jnp.pad(a, ((0, 0), (0, n - a.shape[1])))

    def pad_rows(a, n=32):
        return jnp.pad(a, ((0, n - a.shape[0]), (0, 0)))

    w3p = pad_cols(w3)                    # (32, 32), cols 16..31 zero
    wmup = pad_cols(pad_rows(wmu, 32))    # (32, 32), rows 16..31 / cols 4..31 zero
    w_slab = jnp.concatenate([w1, w2, w3p, wmup], axis=0)       # (120, 32)

    v_slab = jnp.concatenate(
        [g1, be1, g2, be2,
         pad_cols(g3), pad_cols(be3), pad_cols(bmu),
         jnp.zeros((1, 32), jnp.float32)], axis=0)              # (8, 32)

    return w_slab, v_slab


def munet2_reference(x, params):
    """Pure-JAX reference matching the PyTorch module exactly
    (with pre-BN biases and two-pass batch statistics)."""
    (w1, b1, g1, be1, w2, b2, g2, be2, w3, b3, g3, be3, wmu, bmu) = params

    def bn_relu(h, g, be):
        mean = jnp.mean(h, axis=0, keepdims=True)
        var = jnp.mean((h - mean) ** 2, axis=0, keepdims=True)
        return jnp.maximum((h - mean) / jnp.sqrt(var + EPS) * g + be, 0.0)

    h = bn_relu(x @ w1 + b1, g1, be1)
    h = bn_relu(h @ w2 + b2, g2, be2)
    h = bn_relu(h @ w3 + b3, g3, be3)
    return jnp.tanh(h @ wmu + bmu)


if __name__ == "__main__":
    key = jax.random.PRNGKey(0)
    k_x, k_p = jax.random.split(key)

    B = 8  # input features fixed at 24 by the module
    x = jax.random.normal(k_x, (B, 24), dtype=jnp.float32)
    params = init_params(k_p)
    w_slab, v_slab = pack_params(params)   # packed once, outside the hot call

    mu = munet2_forward(x, w_slab, v_slab)
    mu = jax.block_until_ready(mu)

    ref = munet2_reference(x, params)
    assert mu.shape == (B, 4)
    assert jnp.allclose(mu, ref, atol=1e-4, rtol=1e-4), \
        f"max abs err {jnp.max(jnp.abs(mu - ref))}"

    print("KERNEL_OK")
</pallas_src>

<mosaic_0001>
module attributes {stable_mosaic.version = 11 : i64} {
  func.func @munet2_kernel(%arg0: memref<8x24xf32, #tpu.memory_space<vmem>>, %arg1: memref<120x32xf32, #tpu.memory_space<vmem>>, %arg2: memref<8x32xf32, #tpu.memory_space<vmem>>, %arg3: memref<8x4xf32, #tpu.memory_space<vmem>>) attributes {dimension_semantics = [], scalar_prefetch = 0 : i64, scratch_operands = 0 : i64, tpu.core_type = #tpu.core_type<tc>} {
    %c0 = arith.constant 0 : index
    %c0_0 = arith.constant 0 : index
    %0 = vector.load %arg0[%c0, %c0_0] : memref<8x24xf32, #tpu.memory_space<vmem>>, vector<8x24xf32>
    %c0_1 = arith.constant 0 : index
    %c0_2 = arith.constant 0 : index
    %1 = vector.load %arg1[%c0_1, %c0_2] : memref<120x32xf32, #tpu.memory_space<vmem>>, vector<24x32xf32>
    %c24 = arith.constant 24 : index
    %c0_3 = arith.constant 0 : index
    %2 = vector.load %arg1[%c24, %c0_3] : memref<120x32xf32, #tpu.memory_space<vmem>>, vector<32x32xf32>
    %c56 = arith.constant 56 : index
    %c0_4 = arith.constant 0 : index
    %3 = vector.load %arg1[%c56, %c0_4] : memref<120x32xf32, #tpu.memory_space<vmem>>, vector<32x32xf32>
    %c88 = arith.constant 88 : index
    %c0_5 = arith.constant 0 : index
    %4 = vector.load %arg1[%c88, %c0_5] : memref<120x32xf32, #tpu.memory_space<vmem>>, vector<32x32xf32>
    %c0_6 = arith.constant 0 : index
    %c0_7 = arith.constant 0 : index
    %5 = vector.load %arg2[%c0_6, %c0_7] : memref<8x32xf32, #tpu.memory_space<vmem>>, vector<1x32xf32>
    %c1 = arith.constant 1 : index
    %c0_8 = arith.constant 0 : index
    %6 = vector.load %arg2[%c1, %c0_8] : memref<8x32xf32, #tpu.memory_space<vmem>>, vector<1x32xf32>
    %c2 = arith.constant 2 : index
    %c0_9 = arith.constant 0 : index
    %7 = vector.load %arg2[%c2, %c0_9] : memref<8x32xf32, #tpu.memory_space<vmem>>, vector<1x32xf32>
    %c3 = arith.constant 3 : index
    %c0_10 = arith.constant 0 : index
    %8 = vector.load %arg2[%c3, %c0_10] : memref<8x32xf32, #tpu.memory_space<vmem>>, vector<1x32xf32>
    %c4 = arith.constant 4 : index
    %c0_11 = arith.constant 0 : index
    %9 = vector.load %arg2[%c4, %c0_11] : memref<8x32xf32, #tpu.memory_space<vmem>>, vector<1x32xf32>
    %c5 = arith.constant 5 : index
    %c0_12 = arith.constant 0 : index
    %10 = vector.load %arg2[%c5, %c0_12] : memref<8x32xf32, #tpu.memory_space<vmem>>, vector<1x32xf32>
    %c6 = arith.constant 6 : index
    %c0_13 = arith.constant 0 : index
    %11 = vector.load %arg2[%c6, %c0_13] : memref<8x32xf32, #tpu.memory_space<vmem>>, vector<1x32xf32>
    %cst = arith.constant dense<0.000000e+00> : vector<8x32xf32>
    %12 = tpu.matmul %0, %1, %cst {dimension_numbers = #tpu.dot_dimension_numbers<[1], [0], [0], [1], [0, 0, 1, 1], [], []>} : vector<8x24xf32>, vector<24x32xf32>, vector<8x32xf32> -> vector<8x32xf32>
    %cst_14 = arith.constant dense<0.000000e+00> : vector<32xf32>
    %13 = vector.multi_reduction <add>, %12, %cst_14 [0] : vector<8x32xf32> to vector<32xf32>
    %14 = vector.shape_cast %13 : vector<32xf32> to vector<1x32xf32>
    %15 = arith.mulf %12, %12 : vector<8x32xf32>
    %cst_15 = arith.constant dense<0.000000e+00> : vector<32xf32>
    %16 = vector.multi_reduction <add>, %15, %cst_15 [0] : vector<8x32xf32> to vector<32xf32>
    %17 = vector.shape_cast %16 : vector<32xf32> to vector<1x32xf32>
    %cst_16 = arith.constant 1.250000e-01 : f32
    %18 = vector.broadcast %cst_16 : f32 to vector<1x32xf32>
    %19 = arith.mulf %14, %18 : vector<1x32xf32>
    %cst_17 = arith.constant 1.250000e-01 : f32
    %20 = vector.broadcast %cst_17 : f32 to vector<1x32xf32>
    %21 = arith.mulf %17, %20 : vector<1x32xf32>
    %22 = arith.mulf %19, %19 : vector<1x32xf32>
    %23 = arith.subf %21, %22 : vector<1x32xf32>
    %cst_18 = arith.constant 9.99999974E-6 : f32
    %24 = vector.broadcast %cst_18 : f32 to vector<1x32xf32>
    %25 = arith.addf %23, %24 : vector<1x32xf32>
    %26 = math.rsqrt %25 : vector<1x32xf32>
    %27 = arith.mulf %5, %26 : vector<1x32xf32>
    %28 = arith.mulf %19, %27 : vector<1x32xf32>
    %29 = arith.subf %6, %28 : vector<1x32xf32>
    %30 = vector.broadcast %27 : vector<1x32xf32> to vector<8x32xf32>
    %31 = arith.mulf %12, %30 : vector<8x32xf32>
    %32 = vector.broadcast %29 : vector<1x32xf32> to vector<8x32xf32>
    %33 = arith.addf %31, %32 : vector<8x32xf32>
    %cst_19 = arith.constant 0.000000e+00 : f32
    %34 = vector.broadcast %cst_19 : f32 to vector<8x32xf32>
    %35 = arith.maximumf %33, %34 : vector<8x32xf32>
    %cst_20 = arith.constant dense<0.000000e+00> : vector<8x32xf32>
    %36 = tpu.matmul %35, %2, %cst_20 {dimension_numbers = #tpu.dot_dimension_numbers<[1], [0], [0], [1], [0, 0, 1, 1], [], []>} : vector<8x32xf32>, vector<32x32xf32>, vector<8x32xf32> -> vector<8x32xf32>
    %cst_21 = arith.constant dense<0.000000e+00> : vector<32xf32>
    %37 = vector.multi_reduction <add>, %36, %cst_21 [0] : vector<8x32xf32> to vector<32xf32>
    %38 = vector.shape_cast %37 : vector<32xf32> to vector<1x32xf32>
    %39 = arith.mulf %36, %36 : vector<8x32xf32>
    %cst_22 = arith.constant dense<0.000000e+00> : vector<32xf32>
    %40 = vector.multi_reduction <add>, %39, %cst_22 [0] : vector<8x32xf32> to vector<32xf32>
    %41 = vector.shape_cast %40 : vector<32xf32> to vector<1x32xf32>
    %cst_23 = arith.constant 1.250000e-01 : f32
    %42 = vector.broadcast %cst_23 : f32 to vector<1x32xf32>
    %43 = arith.mulf %38, %42 : vector<1x32xf32>
    %cst_24 = arith.constant 1.250000e-01 : f32
    %44 = vector.broadcast %cst_24 : f32 to vector<1x32xf32>
    %45 = arith.mulf %41, %44 : vector<1x32xf32>
    %46 = arith.mulf %43, %43 : vector<1x32xf32>
    %47 = arith.subf %45, %46 : vector<1x32xf32>
    %cst_25 = arith.constant 9.99999974E-6 : f32
    %48 = vector.broadcast %cst_25 : f32 to vector<1x32xf32>
    %49 = arith.addf %47, %48 : vector<1x32xf32>
    %50 = math.rsqrt %49 : vector<1x32xf32>
    %51 = arith.mulf %7, %50 : vector<1x32xf32>
    %52 = arith.mulf %43, %51 : vector<1x32xf32>
    %53 = arith.subf %8, %52 : vector<1x32xf32>
    %54 = vector.broadcast %51 : vector<1x32xf32> to vector<8x32xf32>
    %55 = arith.mulf %36, %54 : vector<8x32xf32>
    %56 = vector.broadcast %53 : vector<1x32xf32> to vector<8x32xf32>
    %57 = arith.addf %55, %56 : vector<8x32xf32>
    %cst_26 = arith.constant 0.000000e+00 : f32
    %58 = vector.broadcast %cst_26 : f32 to vector<8x32xf32>
    %59 = arith.maximumf %57, %58 : vector<8x32xf32>
    %cst_27 = arith.constant dense<0.000000e+00> : vector<8x32xf32>
    %60 = tpu.matmul %59, %3, %cst_27 {dimension_numbers = #tpu.dot_dimension_numbers<[1], [0], [0], [1], [0, 0, 1, 1], [], []>} : vector<8x32xf32>, vector<32x32xf32>, vector<8x32xf32> -> vector<8x32xf32>
    %cst_28 = arith.constant dense<0.000000e+00> : vector<32xf32>
    %61 = vector.multi_reduction <add>, %60, %cst_28 [0] : vector<8x32xf32> to vector<32xf32>
    %62 = vector.shape_cast %61 : vector<32xf32> to vector<1x32xf32>
    %63 = arith.mulf %60, %60 : vector<8x32xf32>
    %cst_29 = arith.constant dense<0.000000e+00> : vector<32xf32>
    %64 = vector.multi_reduction <add>, %63, %cst_29 [0] : vector<8x32xf32> to vector<32xf32>
    %65 = vector.shape_cast %64 : vector<32xf32> to vector<1x32xf32>
    %cst_30 = arith.constant 1.250000e-01 : f32
    %66 = vector.broadcast %cst_30 : f32 to vector<1x32xf32>
    %67 = arith.mulf %62, %66 : vector<1x32xf32>
    %cst_31 = arith.constant 1.250000e-01 : f32
    %68 = vector.broadcast %cst_31 : f32 to vector<1x32xf32>
    %69 = arith.mulf %65, %68 : vector<1x32xf32>
    %70 = arith.mulf %67, %67 : vector<1x32xf32>
    %71 = arith.subf %69, %70 : vector<1x32xf32>
    %cst_32 = arith.constant 9.99999974E-6 : f32
    %72 = vector.broadcast %cst_32 : f32 to vector<1x32xf32>
    %73 = arith.addf %71, %72 : vector<1x32xf32>
    %74 = math.rsqrt %73 : vector<1x32xf32>
    %75 = arith.mulf %9, %74 : vector<1x32xf32>
    %76 = arith.mulf %67, %75 : vector<1x32xf32>
    %77 = arith.subf %10, %76 : vector<1x32xf32>
    %78 = vector.broadcast %75 : vector<1x32xf32> to vector<8x32xf32>
    %79 = arith.mulf %60, %78 : vector<8x32xf32>
    %80 = vector.broadcast %77 : vector<1x32xf32> to vector<8x32xf32>
    %81 = arith.addf %79, %80 : vector<8x32xf32>
    %cst_33 = arith.constant 0.000000e+00 : f32
    %82 = vector.broadcast %cst_33 : f32 to vector<8x32xf32>
    %83 = arith.maximumf %81, %82 : vector<8x32xf32>
    %cst_34 = arith.constant dense<0.000000e+00> : vector<8x32xf32>
    %84 = tpu.matmul %83, %4, %cst_34 {dimension_numbers = #tpu.dot_dimension_numbers<[1], [0], [0], [1], [0, 0, 1, 1], [], []>} : vector<8x32xf32>, vector<32x32xf32>, vector<8x32xf32> -> vector<8x32xf32>
    %85 = vector.broadcast %11 : vector<1x32xf32> to vector<8x32xf32>
    %86 = arith.addf %84, %85 : vector<8x32xf32>
    %87 = math.tanh %86 : vector<8x32xf32>
    %88 = vector.extract_strided_slice %87 {offsets = [0, 0], sizes = [8, 4], strides = [1, 1]} : vector<8x32xf32> to vector<8x4xf32>
    %c0_35 = arith.constant 0 : index
    %c0_36 = arith.constant 0 : index
    %89 = vector.load %arg3[%c0_35, %c0_36] : memref<8x4xf32, #tpu.memory_space<vmem>>, vector<8x4xf32>
    tpu.vector_store %arg3[%c0_35, %c0_36], %88 {strides = array<i32>} : memref<8x4xf32, #tpu.memory_space<vmem>>, vector<8x4xf32>,
    return
  }
}

</mosaic_0001>

<bundles_post_ra>
// kernel: tpu_custom_call.1
= control target key start
LH: loop header
LB: loop body
LE: loop exit
PB: predicated region body
PF: predicated region fallthrough
CT: control target
= control target key end

     0   :  { %v545_v0 = vmov 0.0|0.0   ;;  %vm546_vm0 = vmmov 0   ;;  %v547_v3 = vmov 0.0   ;;  %vm37_vm1 = vcmask 195584   ;;  %s673_s1 = inlined_call_operand.vmem [shape: f32[120,32], index: 1, kind: input, shape index: {}]   ;;  %s674_s0 = inlined_call_operand.vmem [shape: f32[8,24], index: 0, kind: input, shape index: {}]   ;;  %s675_s2 = inlined_call_operand.vmem [shape: f32[8,32], index: 2, kind: input, shape index: {}]   ;;  %s676_s3 = inlined_call_operand.vmem [shape: f32[8,4], index: 3, kind: output, shape index: {}]  }
   0x1   :  { %513 = vmatprep.subr.bf16.mxu0 %v545_v0  ;;  %v15_v1 = vld [vmem:[%s673_s1] sm:$0xff]  ;;  %v16_v2 = vld [vmem:[%s673_s1 + $0x8] sm:$0xff]  ;;  %477 = vmatprep.mubr.msk.f32.mxu0 %vm546_vm0, %v547_v3  ;;  %v17_v5 = vld [vmem:[%s673_s1 + $0x10] sm:$0xff]  ;;  %vm111_vm2 = vcmask 261120   ;;  %v136_v35 = vlaneseq  ;;  %vm441_vm3 = vcmask 31744  }
   0x2   :  { %v514_v4 = vpack.c.bf16 %v16_v2, %v15_v1  ;;  %516 = vmatprep.subr.bf16.mxu1 %v545_v0  ;;  %488 = vmatprep.mubr.msk.f32.mxu1 %vm546_vm0, %v547_v3  ;;  %v14_v6 = vld [vmem:[%s674_s0] sm:$0xff]  ;;  %v18_v7 = vld [vmem:[%s673_s1 + $0x18] sm:$0xff]  ;;  %v20_v10 = vld [vmem:[%s673_s1 + $0x28] sm:$0xff] }
   0x3   :  { %v19_v8 = vld [vmem:[%s673_s1 + $0x20] sm:$0xff]  ;;  %v21_v11 = vld [vmem:[%s673_s1 + $0x30] sm:$0xff]  ;;  %v137_v36 = vshrl.u32 %v136_v35, 7  ;;  %v22_v49 = vld [vmem:[%s673_s1 + $0x38] sm:$0xff] }
   0x4   :  { %515 = vmatpush3.bf16.msra.mxu0 %v514_v4  ;;  %v517_v9 = vpack.c.bf16 %v19_v8, %v18_v7  ;;  %v520_v12 = vpack.c.bf16 %v21_v11, %v20_v10  ;;  %v30_v37 = vld [vmem:[%s675_s2] sm:$0x1]  ;;  %v31_v41 = vld [vmem:[%s675_s2 + $0x1] sm:$0x1]  ;;  %v24_v52 = vld [vmem:[%s673_s1 + $0x48] sm:$0xff] }
   0x5   :  { %475 = vmatprep.subr.mxu0 %v547_v3  ;;  %v609_v38 = vsub.s32 0, %v137_v36  ;;  %v23_v50 = vld [vmem:[%s673_s1 + $0x40] sm:$0xff]  ;;  %v25_v53 = vld [vmem:[%s673_s1 + $0x50] sm:$0xff] }
   0x6   :  { %518 = vmatpush3.bf16.msra.mxu1 %v517_v9  ;;  %v523_v51 = vpack.c.bf16 %v23_v50, %v22_v49  ;;  %v526_v54 = vpack.c.bf16 %v25_v53, %v24_v52  ;;  %v34_v53 = vld [vmem:[%s675_s2 + $0x4] sm:$0x1] }
   0x7   :  { %519 = vmatprep.subr.bf16.mxu1 %v545_v0 }
   0x8   :  { %476 = vmatpush3.msra.mxu0 %v17_v5 }
   0x9   :  { %478 = vmatmul.mubr.msk.f32.vlgmr.msra.gmra.mrb[0].mxu0 %vm37_vm1, %v14_v6  ;;  %522 = vmatprep.subr.bf16.mxu0 %v545_v0 }
   0xa   :  { %499 = vmatprep.mubr.msk.f32.mxu0 %vm546_vm0, %v547_v3  ;;  %521 = vmatpush3.bf16.msra.mxu1 %v520_v12 }
   0xb   :  { %528 = vmatprep.subr.bf16.mxu1 %v545_v0  ;;  %524 = vmatpush3.bf16.msra.mxu0 %v523_v51 }
   0xc   :  { %525 = vmatprep.subr.bf16.mxu0 %v545_v0 }
   0xf   :  { %527 = vmatpush3.bf16.msra.mxu0 %v526_v54 }
  0xdc   :  { %v107_v13 = vpop.f32.mrb[0].mxu0 }
  0xdd   :  { %v112_v14 = vsel %vm111_vm2, %v107_v13, 0.0  ;;  %v119_v15 = vmul.f32 %v107_v13, %v107_v13  ;;  %v479_v16 = vpop.f32.mrb[1].mxu0 }
  0xde   :  { %v113_v17 = vrot.slane %v112_v14, 4 }
  0xdf   :  { %v120_v18 = vsel %vm111_vm2, %v119_v15, 0.0 }
  0xe0   :  { %v114_v19 = vadd.f32 %v113_v17, %v112_v14  ;;  %v121_v20 = vrot.slane %v120_v18, 4  ;;  %v32_v14 = vld [vmem:[%s675_s2 + $0x2] sm:$0x1]  ;;  %v33_v17 = vld [vmem:[%s675_s2 + $0x3] sm:$0x1] }
  0xe2   :  { %v115_v21 = vrot.slane %v114_v19, 2  ;;  %v122_v22 = vadd.f32 %v121_v20, %v120_v18 }
  0xe4   :  { %v116_v23 = vadd.f32 %v115_v21, %v114_v19  ;;  %v123_v24 = vrot.slane %v122_v22, 2 }
  0xe6   :  { %v117_v25 = vrot.slane %v116_v23, 1  ;;  %v124_v26 = vadd.f32 %v123_v24, %v122_v22 }
  0xe8   :  { %v118_v27 = vadd.f32 %v117_v25, %v116_v23  ;;  %v125_v28 = vrot.slane %v124_v26, 1  ;;  %v26_v25 = vld [vmem:[%s673_s1 + $0x58] sm:$0xff] }
  0xea   :  { %v126_v29 = vadd.f32 %v125_v28, %v124_v26  ;;  %v127_v30 = vmul.f32 0.125, %v118_v27  ;;  %v27_v26 = vld [vmem:[%s673_s1 + $0x60] sm:$0xff]  ;;  %v28_v28 = vld [vmem:[%s673_s1 + $0x68] sm:$0xff] }
  0xeb   :  { %v529_v27 = vpack.c.bf16 %v27_v26, %v26_v25 }
  0xec   :  { %v128_v31 = vmul.f32 0.125, %v126_v29  ;;  %v129_v32 = vmul.f32 %v127_v30, %v127_v30  ;;  %v29_v29 = vld [vmem:[%s673_s1 + $0x70] sm:$0xff] }
  0xee   :  { %v130_v33 = vsub.f32 %v128_v31, %v129_v32 }
  0xf0   :  { %v131_v34 = vadd.f32 1e-05, %v130_v33 }
  0xf2   :  { %537 = vrsqrt.f32 %v131_v34 }
  0xfc   :  { %v538_v39 = vpop.eup %537 }
  0xfd   :  { %v133_v40 = vmul.f32 %v538_v39, %v30_v37 }
  0xff   :  { %v134_v42 = vmul.f32 %v133_v40, %v127_v30  ;;  %v139_v43 = vrot.slane %v133_v40, %v609_v38  ;;  %v532_v30 = vpack.c.bf16 %v29_v29, %v28_v28 }
 0x101   :  { %v135_v44 = vsub.f32 %v31_v41, %v134_v42  ;;  %v140_v45 = vmul.f32 %v139_v43, %v107_v13 }
 0x103   :  { %v144_v46 = vrot.slane %v135_v44, %v609_v38 }
 0x105   :  { %v145_v47 = vadd.f32 %v144_v46, %v140_v45 }
 0x107   :  { %v146_v48 = vmax.f32 %v145_v47, 0.0 }
 0x109   :  { %489 = vmatmul.mubr.msk.f32.vlgmr.msra.gmra.mrb[0].mxu1 %vm111_vm2, %v146_v48 }
 0x10a   :  { %510 = vmatprep.mubr.msk.f32.mxu1 %vm546_vm0, %v547_v3  ;;  %530 = vmatpush3.bf16.msra.mxu1 %v529_v27 }
 0x10b   :  { %531 = vmatprep.subr.bf16.mxu1 %v545_v0 }
 0x10e   :  { %533 = vmatpush3.bf16.msra.mxu1 %v532_v30 }
 0x1dc   :  { %v216_v55 = vpop.f32.mrb[0].mxu1 }
 0x1dd   :  { %v220_v56 = vsel %vm111_vm2, %v216_v55, 0.0  ;;  %v227_v57 = vmul.f32 %v216_v55, %v216_v55  ;;  %v490_v58 = vpop.f32.mrb[1].mxu1 }
 0x1de   :  { %v221_v59 = vrot.slane %v220_v56, 4 }
 0x1df   :  { %v228_v60 = vsel %vm111_vm2, %v227_v57, 0.0 }
 0x1e0   :  { %v222_v61 = vadd.f32 %v221_v59, %v220_v56  ;;  %v229_v62 = vrot.slane %v228_v60, 4  ;;  %v35_v56 = vld [vmem:[%s675_s2 + $0x5] sm:$0x1] }
 0x1e2   :  { %v223_v63 = vrot.slane %v222_v61, 2  ;;  %v230_v1 = vadd.f32 %v229_v62, %v228_v60 }
 0x1e4   :  { %v224_v2 = vadd.f32 %v223_v63, %v222_v61  ;;  %v231_v3 = vrot.slane %v230_v1, 2 }
 0x1e6   :  { %v225_v4 = vrot.slane %v224_v2, 1  ;;  %v232_v5 = vadd.f32 %v231_v3, %v230_v1  ;;  %v450_v1 = vld [vmem:[%s675_s2 + $0x6] ss:$0 sm:$0xff] }
 0x1e8   :  { %v226_v6 = vadd.f32 %v225_v4, %v224_v2  ;;  %v233_v7 = vrot.slane %v232_v5, 1 }
 0x1ea   :  { %v234_v8 = vadd.f32 %v233_v7, %v232_v5  ;;  %v235_v9 = vmul.f32 0.125, %v226_v6 }
 0x1ec   :  { %v236_v10 = vmul.f32 0.125, %v234_v8  ;;  %v237_v11 = vmul.f32 %v235_v9, %v235_v9 }
 0x1ee   :  { %v238_v12 = vsub.f32 %v236_v10, %v237_v11 }
 0x1f0   :  { %v239_v13 = vadd.f32 1e-05, %v238_v12 }
 0x1f2   :  { %539 = vrsqrt.f32 %v239_v13 }
 0x1fc   :  { %v540_v15 = vpop.eup %539 }
 0x1fd   :  { %v241_v16 = vmul.f32 %v540_v15, %v32_v14 }
 0x1ff   :  { %v242_v18 = vmul.f32 %v241_v16, %v235_v9  ;;  %v247_v19 = vrot.slane %v241_v16, %v609_v38 }
 0x201   :  { %v243_v20 = vsub.f32 %v33_v17, %v242_v18  ;;  %v248_v21 = vmul.f32 %v247_v19, %v216_v55 }
 0x203   :  { %v252_v22 = vrot.slane %v243_v20, %v609_v38 }
 0x205   :  { %v253_v23 = vadd.f32 %v252_v22, %v248_v21 }
 0x207   :  { %v254_v24 = vmax.f32 %v253_v23, 0.0 }
 0x209   :  { %500 = vmatmul.mubr.msk.f32.vlgmr.msra.gmra.mrb[2].mxu0 %vm111_vm2, %v254_v24 }
 0x2dc   :  { %v324_v31 = vpop.f32.mrb[2].mxu0 }
 0x2dd   :  { %v328_v32 = vsel %vm111_vm2, %v324_v31, 0.0  ;;  %v335_v33 = vmul.f32 %v324_v31, %v324_v31  ;;  %v501_v34 = vpop.f32.mrb[3].mxu0 }
 0x2de   :  { %v329_v35 = vrot.slane %v328_v32, 4 }
 0x2df   :  { %v336_v36 = vsel %vm111_vm2, %v335_v33, 0.0 }
 0x2e0   :  { %v330_v37 = vadd.f32 %v329_v35, %v328_v32  ;;  %v337_v0 = vrot.slane %v336_v36, 4 }
 0x2e2   :  { %v331_v39 = vrot.slane %v330_v37, 2  ;;  %v338_v40 = vadd.f32 %v337_v0, %v336_v36 }
 0x2e4   :  { %v332_v41 = vadd.f32 %v331_v39, %v330_v37  ;;  %v339_v42 = vrot.slane %v338_v40, 2 }
 0x2e6   :  { %v333_v43 = vrot.slane %v332_v41, 1  ;;  %v340_v44 = vadd.f32 %v339_v42, %v338_v40 }
 0x2e8   :  { %v334_v45 = vadd.f32 %v333_v43, %v332_v41  ;;  %v341_v46 = vrot.slane %v340_v44, 1 }
 0x2ea   :  { %v342_v47 = vadd.f32 %v341_v46, %v340_v44  ;;  %v343_v48 = vmul.f32 0.125, %v334_v45 }
 0x2ec   :  { %v344_v49 = vmul.f32 0.125, %v342_v47  ;;  %v345_v50 = vmul.f32 %v343_v48, %v343_v48 }
 0x2ee   :  { %v346_v51 = vsub.f32 %v344_v49, %v345_v50 }
 0x2f0   :  { %v347_v52 = vadd.f32 1e-05, %v346_v51 }
 0x2f2   :  { %541 = vrsqrt.f32 %v347_v52 }
 0x2fc   :  { %v542_v54 = vpop.eup %541 }
 0x2fd   :  { %v349_v55 = vmul.f32 %v542_v54, %v34_v53 }
 0x2ff   :  { %v350_v57 = vmul.f32 %v349_v55, %v343_v48  ;;  %v355_v58 = vrot.slane %v349_v55, %v609_v38 }
 0x301   :  { %v351_v59 = vsub.f32 %v35_v56, %v350_v57  ;;  %v356_v60 = vmul.f32 %v355_v58, %v324_v31 }
 0x303   :  { %v360_v61 = vrot.slane %v351_v59, %v609_v38 }
 0x305   :  { %v361_v62 = vadd.f32 %v360_v61, %v356_v60 }
 0x307   :  { %v362_v63 = vmax.f32 %v361_v62, 0.0 }
 0x309   :  { %511 = vmatmul.mubr.msk.f32.vlgmr.msra.gmra.mrb[2].mxu1 %vm111_vm2, %v362_v63 }
 0x3dc   :  { %v436_v2 = vpop.f32.mrb[2].mxu1 }
 0x3dd   :  { %v437_v3 = vadd.f32 %v450_v1, %v436_v2  ;;  %v512_v4 = vpop.f32.mrb[3].mxu1 }
 0x3df   :  { %543 = vtanh.f32 %v437_v3 }
 0x3e9   :  { %v544_v5 = vpop.eup %543 }
 0x3ea   :  { %442 = vst.msk [vmem:[%s676_s3] sm:$0xff] %vm441_vm3, %v544_v5 }

</bundles_post_ra>
